<compile_context>
chip_gen: v6e
topology: v6e:2x2x1
jax: 0.10.0
libtpu: 0.0.40
codegen_flags: <defaults>
</compile_context>

<pallas_src>
import jax
import jax.numpy as jnp
from jax.experimental import pallas as pl
from jax.experimental.pallas import tpu as pltpu

P_FEAT = 128  # lane width; requires hidden_size <= 128


# ---------------- fused Pallas kernel ----------------

def _tree_fused_kernel(li_ref, ri_ref,     # SMEM int32 (n_sched_pad,): schedule
                       leaves_ref,         # VMEM f32 (n_leaf_pad, 128): leaf value bcast over lanes
                       w_ref,              # VMEM f32 (8, 128): packed weights (see class)
                       out_ref,            # VMEM f32 (1, 128): score bcast over lanes
                       act_ref):           # VMEM scratch f32 (n_leaf_pad + n_sched_pad, 128)
    n_leaf_pad = leaves_ref.shape[0]
    n_sched_pad = li_ref.shape[0]

    # Seed leaf activations: dense, sublane-aligned multi-row VMEM copy.
    act_ref[pl.ds(0, n_leaf_pad), :] = leaves_ref[...]

    # Hoisted (1, 128) weight rows -- one resident (8,128) tile.
    wl_row  = w_ref[pl.ds(0, 1), :]   # W_node[:, 0] over lanes (padded with 0)
    wr_row  = w_ref[pl.ds(1, 1), :]   # W_node[:, 1]
    b_row   = w_ref[pl.ds(2, 1), :]   # b_node
    wfc_row = w_ref[pl.ds(3, 1), :]   # w_fc
    wl_s    = w_ref[pl.ds(4, 1), :]   # splat: W_node[0, 0]
    wr_s    = w_ref[pl.ds(5, 1), :]   # splat: W_node[0, 1]
    b_s     = w_ref[pl.ds(6, 1), :]   # splat: b_node[0]
    bfc_row = w_ref[pl.ds(7, 1), :]   # splat: b_fc

    # Serial post-order chain, pure VPU.  Each node stores its scalar output
    # broadcast across all lanes, so child reads need no cross-lane gather.
    # Front-padded no-op entries read row 0 and write to unused rows, keeping the
    # trip count static per bucket (bounded unroll, no pl.when in the hot loop).
    def body(i, carry):
        l = act_ref[pl.ds(li_ref[i], 1), :]
        r = act_ref[pl.ds(ri_ref[i], 1), :]
        h = jnp.maximum(l * wl_s + r * wr_s + b_s, 0.0)
        act_ref[pl.ds(n_leaf_pad + i, 1), :] = h
        return carry

    jax.lax.fori_loop(0, n_sched_pad, body, 0, unroll=8)

    # Epilogue: root's full (1, hidden) activation row, then the final fc.
    root_l = act_ref[pl.ds(li_ref[n_sched_pad - 1], 1), :]
    root_r = act_ref[pl.ds(ri_ref[n_sched_pad - 1], 1), :]
    root_row = jnp.maximum(root_l * wl_row + root_r * wr_row + b_row, 0.0)
    score = jnp.sum(root_row * wfc_row, axis=-1, keepdims=True)      # (1, 1)
    out_ref[...] = score + bfc_row                                   # dense (1, 128) store


@jax.jit
def _fused_predict(li, ri, leaf_vals, w_tile):
    n_sched_pad = li.shape[0]
    n_leaf_pad = leaf_vals.shape[0]
    leaves_bcast = jnp.broadcast_to(leaf_vals[:, None], (n_leaf_pad, P_FEAT))

    n_rows = n_leaf_pad + n_sched_pad
    vmem_bytes = 4 * P_FEAT * (n_rows + n_leaf_pad + 8 + 1)
    vmem_limit = int(min(64 * 1024 * 1024, max(2 * 1024 * 1024, 2 * vmem_bytes)))

    smem = pl.BlockSpec(memory_space=pltpu.MemorySpace.SMEM)
    vmem = pl.BlockSpec(memory_space=pltpu.MemorySpace.VMEM)

    out = pl.pallas_call(
        _tree_fused_kernel,
        out_shape=jax.ShapeDtypeStruct((1, P_FEAT), jnp.float32),
        in_specs=[smem, smem, vmem, vmem],
        out_specs=vmem,
        scratch_shapes=[pltpu.VMEM((n_rows, P_FEAT), jnp.float32)],
        compiler_params=pltpu.CompilerParams(vmem_limit_bytes=vmem_limit),
        cost_estimate=pl.CostEstimate(
            flops=5 * P_FEAT * (n_sched_pad + 1),
            transcendentals=0,
            bytes_accessed=vmem_bytes,
        ),
        # Single serial tree => no grid.  For multi-tree workloads on v7x, batch
        # independent trees over a leading "parallel" grid axis to use both TCs.
    )(li, ri, leaves_bcast, w_tile)
    return out[:, :1]   # un-broadcast the scalar score -> (1, 1)


# ---------------- static tree -> post-order schedule ----------------

def _flatten_tree(tree):
    """Post-order flatten. Returns (leaf_values, schedule, root_ref); schedule is a
    list of ((kind, idx), (kind, idx)) child references, kind in {"leaf","node"}."""
    leaves, sched = [], []

    def rec(t):
        if isinstance(t, int):
            leaves.append(float(t))
            return ("leaf", len(leaves) - 1)
        left, right = t
        l = rec(left)
        r = rec(right)
        sched.append((l, r))
        return ("node", len(sched) - 1)

    root = rec(tree)
    return leaves, sched, root


def _bucket(n):
    """Round up to a power of two, minimum 8 (keeps retraces rare, tiles aligned)."""
    return max(8, 1 << max(0, n - 1).bit_length())


# ---------------- TreeRNN wrapper ----------------

class TreeRNNPallas:
    def __init__(self, leaf_size, hidden_size, key):
        # Leaves in the PyTorch module are always width-1 tensors, so the only
        # shape-consistent configuration has leaf_size == 1.
        assert leaf_size == 1, "TreeRNN leaves are width-1 vectors => leaf_size must be 1"
        assert 1 <= hidden_size <= P_FEAT
        self.leaf_size = leaf_size
        self.hidden_size = hidden_size
        k1, k2, k3, k4 = jax.random.split(key, 4)

        # node.fc : nn.Linear(2 * leaf_size, hidden_size), PyTorch default init.
        bound1 = 1.0 / float(2 * leaf_size) ** 0.5
        self.w_node = jax.random.uniform(k1, (hidden_size, 2 * leaf_size),
                                         jnp.float32, -bound1, bound1)
        self.b_node = jax.random.uniform(k2, (hidden_size,), jnp.float32, -bound1, bound1)

        # fc : nn.Linear(hidden_size, 1)
        bound2 = 1.0 / float(hidden_size) ** 0.5
        self.w_fc = jax.random.uniform(k3, (1, hidden_size), jnp.float32, -bound2, bound2)
        self.b_fc = jax.random.uniform(k4, (1,), jnp.float32, -bound2, bound2)

        # Pack all parameters into one lane-dense (8, 128) tile (padded cols = 0,
        # so padded activation lanes stay exactly zero through ReLU).
        h = hidden_size
        t = jnp.zeros((8, P_FEAT), jnp.float32)
        t = t.at[0, :h].set(self.w_node[:, 0])     # row 0: left-input weights
        t = t.at[1, :h].set(self.w_node[:, 1])     # row 1: right-input weights
        t = t.at[2, :h].set(self.b_node)           # row 2: node bias
        t = t.at[3, :h].set(self.w_fc[0, :])       # row 3: final fc weights
        t = t.at[4, :].set(self.w_node[0, 0])      # row 4: splat, unit-0 left weight
        t = t.at[5, :].set(self.w_node[0, 1])      # row 5: splat, unit-0 right weight
        t = t.at[6, :].set(self.b_node[0])         # row 6: splat, unit-0 bias
        t = t.at[7, :].set(self.b_fc[0])           # row 7: splat, fc bias
        self.w_tile = t

    # --- fused-kernel path (one pallas_call per predict) ---
    def predict(self, tree):
        leaf_vals, sched, root = _flatten_tree(tree)
        assert root[0] == "node", "tree must contain at least one internal node"
        for l, r in sched:
            for kind, _ in (l, r):
                if kind == "node":
                    assert self.hidden_size == 1, (
                        "internal-node outputs can only feed another node when "
                        "hidden_size == leaf_size == 1 (same shape constraint as "
                        "the PyTorch module)")

        n_leaves, n_internal = len(leaf_vals), len(sched)
        n_leaf_pad = _bucket(n_leaves)
        n_sched_pad = _bucket(n_internal)
        pad_front = n_sched_pad - n_internal   # no-op entries; root lands at slot -1

        def resolve(ref):
            kind, idx = ref
            return idx if kind == "leaf" else n_leaf_pad + pad_front + idx

        li = [0] * pad_front + [resolve(l) for l, _ in sched]
        ri = [0] * pad_front + [resolve(r) for _, r in sched]
        leaf_vals = leaf_vals + [0.0] * (n_leaf_pad - n_leaves)

        return _fused_predict(jnp.asarray(li, jnp.int32),
                              jnp.asarray(ri, jnp.int32),
                              jnp.asarray(leaf_vals, jnp.float32),
                              self.w_tile)

    # --- pure-jnp reference (correctness check, mirrors TreeRNN.forward/predict) ---
    def forward_ref(self, tree):
        if isinstance(tree, int):
            return jnp.array([[float(tree)]], dtype=jnp.float32)
        left, right = tree
        lv = self.forward_ref(left)
        rv = self.forward_ref(right)
        comb = jnp.concatenate([lv, rv], axis=1)                       # (1, 2)
        pre = (comb[:, :, None] * self.w_node.T[None, :, :]).sum(axis=1) + self.b_node[None, :]
        return jnp.maximum(pre, 0.0)

    def predict_ref(self, tree):
        root = self.forward_ref(tree)                                  # (1, hidden)
        return (root * self.w_fc).sum(axis=1, keepdims=True) + self.b_fc[None, :]


if __name__ == "__main__":
    # Case 1: depth-1 tree, hidden_size=32 (leaf vectors are (1,1) => leaf_size=1).
    model = TreeRNNPallas(leaf_size=1, hidden_size=32, key=jax.random.PRNGKey(0))
    tree1 = (1, 2)
    s1 = model.predict(tree1)
    jax.block_until_ready(s1)
    assert s1.shape == (1, 1) and s1.dtype == jnp.float32
    r1 = model.predict_ref(tree1)
    assert jnp.allclose(s1, r1, rtol=1e-4, atol=1e-4), (s1, r1)

    # Case 2: deeper tree (the module's shapes only allow depth > 1 when
    # hidden_size == 1), exercising the in-kernel schedule chain.
    model2 = TreeRNNPallas(leaf_size=1, hidden_size=1, key=jax.random.PRNGKey(0))
    tree2 = ((1, 2), (3, 4))
    s2 = model2.predict(tree2)
    jax.block_until_ready(s2)
    r2 = model2.predict_ref(tree2)
    assert s2.shape == (1, 1)
    assert jnp.allclose(s2, r2, rtol=1e-4, atol=1e-4), (s2, r2)

    # Case 3: unbalanced tree with mixed leaf / internal children; same size bucket
    # as case 2, so it reuses the compiled executable (no retrace).
    tree3 = (((1, 2), 3), (4, (5, 6)))
    s3 = model2.predict(tree3)
    jax.block_until_ready(s3)
    r3 = model2.predict_ref(tree3)
    assert jnp.allclose(s3, r3, rtol=1e-4, atol=1e-4), (s3, r3)

    print("KERNEL_OK")
</pallas_src>

<mosaic_0001>
module attributes {stable_mosaic.version = 11 : i64} {
  func.func @_tree_fused_kernel(%arg0: memref<8xi32, #tpu.memory_space<smem>>, %arg1: memref<8xi32, #tpu.memory_space<smem>>, %arg2: memref<8x128xf32, #tpu.memory_space<vmem>>, %arg3: memref<8x128xf32, #tpu.memory_space<vmem>>, %arg4: memref<1x128xf32, #tpu.memory_space<vmem>>, %arg5: memref<16x128xf32, #tpu.memory_space<vmem>>) attributes {dimension_semantics = [], scalar_prefetch = 0 : i64, scratch_operands = 1 : i64, tpu.core_type = #tpu.core_type<tc>} {
    %c0 = arith.constant 0 : index
    %c0_0 = arith.constant 0 : index
    %0 = vector.load %arg2[%c0, %c0_0] : memref<8x128xf32, #tpu.memory_space<vmem>>, vector<8x128xf32>
    %c0_1 = arith.constant 0 : index
    %c0_2 = arith.constant 0 : index
    %1 = vector.load %arg5[%c0_1, %c0_2] : memref<16x128xf32, #tpu.memory_space<vmem>>, vector<8x128xf32>
    tpu.vector_store %arg5[%c0_1, %c0_2], %0 {strides = array<i32>} : memref<16x128xf32, #tpu.memory_space<vmem>>, vector<8x128xf32>,
    %c0_3 = arith.constant 0 : index
    %c0_4 = arith.constant 0 : index
    %2 = vector.load %arg3[%c0_3, %c0_4] : memref<8x128xf32, #tpu.memory_space<vmem>>, vector<1x128xf32>
    %c1 = arith.constant 1 : index
    %c0_5 = arith.constant 0 : index
    %3 = vector.load %arg3[%c1, %c0_5] : memref<8x128xf32, #tpu.memory_space<vmem>>, vector<1x128xf32>
    %c2 = arith.constant 2 : index
    %c0_6 = arith.constant 0 : index
    %4 = vector.load %arg3[%c2, %c0_6] : memref<8x128xf32, #tpu.memory_space<vmem>>, vector<1x128xf32>
    %c3 = arith.constant 3 : index
    %c0_7 = arith.constant 0 : index
    %5 = vector.load %arg3[%c3, %c0_7] : memref<8x128xf32, #tpu.memory_space<vmem>>, vector<1x128xf32>
    %c4 = arith.constant 4 : index
    %c0_8 = arith.constant 0 : index
    %6 = vector.load %arg3[%c4, %c0_8] : memref<8x128xf32, #tpu.memory_space<vmem>>, vector<1x128xf32>
    %c5 = arith.constant 5 : index
    %c0_9 = arith.constant 0 : index
    %7 = vector.load %arg3[%c5, %c0_9] : memref<8x128xf32, #tpu.memory_space<vmem>>, vector<1x128xf32>
    %c6 = arith.constant 6 : index
    %c0_10 = arith.constant 0 : index
    %8 = vector.load %arg3[%c6, %c0_10] : memref<8x128xf32, #tpu.memory_space<vmem>>, vector<1x128xf32>
    %c7 = arith.constant 7 : index
    %c0_11 = arith.constant 0 : index
    %9 = vector.load %arg3[%c7, %c0_11] : memref<8x128xf32, #tpu.memory_space<vmem>>, vector<1x128xf32>
    %c0_i32 = arith.constant 0 : i32
    %10 = arith.index_cast %c0_i32 : i32 to index
    %11 = memref.load %arg0[%10] : memref<8xi32, #tpu.memory_space<smem>>
    %12 = arith.index_cast %11 : i32 to index
    %c0_12 = arith.constant 0 : index
    %13 = vector.load %arg5[%12, %c0_12] : memref<16x128xf32, #tpu.memory_space<vmem>>, vector<1x128xf32>
    %14 = arith.index_cast %c0_i32 : i32 to index
    %15 = memref.load %arg1[%14] : memref<8xi32, #tpu.memory_space<smem>>
    %16 = arith.index_cast %15 : i32 to index
    %c0_13 = arith.constant 0 : index
    %17 = vector.load %arg5[%16, %c0_13] : memref<16x128xf32, #tpu.memory_space<vmem>>, vector<1x128xf32>
    %18 = arith.mulf %13, %6 : vector<1x128xf32>
    %19 = arith.mulf %17, %7 : vector<1x128xf32>
    %20 = arith.addf %18, %19 : vector<1x128xf32>
    %21 = arith.addf %20, %8 : vector<1x128xf32>
    %cst = arith.constant 0.000000e+00 : f32
    %22 = vector.broadcast %cst : f32 to vector<1x128xf32>
    %23 = arith.maximumf %21, %22 : vector<1x128xf32>
    %c8_i32 = arith.constant 8 : i32
    %24 = arith.addi %c8_i32, %c0_i32 : i32
    %25 = arith.index_cast %24 : i32 to index
    %c0_14 = arith.constant 0 : index
    %26 = vector.load %arg5[%25, %c0_14] : memref<16x128xf32, #tpu.memory_space<vmem>>, vector<1x128xf32>
    tpu.vector_store %arg5[%25, %c0_14], %23 {strides = array<i32>} : memref<16x128xf32, #tpu.memory_space<vmem>>, vector<1x128xf32>,
    %c1_i32 = arith.constant 1 : i32
    %27 = arith.index_cast %c1_i32 : i32 to index
    %28 = memref.load %arg0[%27] : memref<8xi32, #tpu.memory_space<smem>>
    %29 = arith.index_cast %28 : i32 to index
    %c0_15 = arith.constant 0 : index
    %30 = vector.load %arg5[%29, %c0_15] : memref<16x128xf32, #tpu.memory_space<vmem>>, vector<1x128xf32>
    %31 = arith.index_cast %c1_i32 : i32 to index
    %32 = memref.load %arg1[%31] : memref<8xi32, #tpu.memory_space<smem>>
    %33 = arith.index_cast %32 : i32 to index
    %c0_16 = arith.constant 0 : index
    %34 = vector.load %arg5[%33, %c0_16] : memref<16x128xf32, #tpu.memory_space<vmem>>, vector<1x128xf32>
    %35 = arith.mulf %30, %6 : vector<1x128xf32>
    %36 = arith.mulf %34, %7 : vector<1x128xf32>
    %37 = arith.addf %35, %36 : vector<1x128xf32>
    %38 = arith.addf %37, %8 : vector<1x128xf32>
    %cst_17 = arith.constant 0.000000e+00 : f32
    %39 = vector.broadcast %cst_17 : f32 to vector<1x128xf32>
    %40 = arith.maximumf %38, %39 : vector<1x128xf32>
    %c8_i32_18 = arith.constant 8 : i32
    %41 = arith.addi %c8_i32_18, %c1_i32 : i32
    %42 = arith.index_cast %41 : i32 to index
    %c0_19 = arith.constant 0 : index
    %43 = vector.load %arg5[%42, %c0_19] : memref<16x128xf32, #tpu.memory_space<vmem>>, vector<1x128xf32>
    tpu.vector_store %arg5[%42, %c0_19], %40 {strides = array<i32>} : memref<16x128xf32, #tpu.memory_space<vmem>>, vector<1x128xf32>,
    %c2_i32 = arith.constant 2 : i32
    %44 = arith.index_cast %c2_i32 : i32 to index
    %45 = memref.load %arg0[%44] : memref<8xi32, #tpu.memory_space<smem>>
    %46 = arith.index_cast %45 : i32 to index
    %c0_20 = arith.constant 0 : index
    %47 = vector.load %arg5[%46, %c0_20] : memref<16x128xf32, #tpu.memory_space<vmem>>, vector<1x128xf32>
    %48 = arith.index_cast %c2_i32 : i32 to index
    %49 = memref.load %arg1[%48] : memref<8xi32, #tpu.memory_space<smem>>
    %50 = arith.index_cast %49 : i32 to index
    %c0_21 = arith.constant 0 : index
    %51 = vector.load %arg5[%50, %c0_21] : memref<16x128xf32, #tpu.memory_space<vmem>>, vector<1x128xf32>
    %52 = arith.mulf %47, %6 : vector<1x128xf32>
    %53 = arith.mulf %51, %7 : vector<1x128xf32>
    %54 = arith.addf %52, %53 : vector<1x128xf32>
    %55 = arith.addf %54, %8 : vector<1x128xf32>
    %cst_22 = arith.constant 0.000000e+00 : f32
    %56 = vector.broadcast %cst_22 : f32 to vector<1x128xf32>
    %57 = arith.maximumf %55, %56 : vector<1x128xf32>
    %c8_i32_23 = arith.constant 8 : i32
    %58 = arith.addi %c8_i32_23, %c2_i32 : i32
    %59 = arith.index_cast %58 : i32 to index
    %c0_24 = arith.constant 0 : index
    %60 = vector.load %arg5[%59, %c0_24] : memref<16x128xf32, #tpu.memory_space<vmem>>, vector<1x128xf32>
    tpu.vector_store %arg5[%59, %c0_24], %57 {strides = array<i32>} : memref<16x128xf32, #tpu.memory_space<vmem>>, vector<1x128xf32>,
    %c3_i32 = arith.constant 3 : i32
    %61 = arith.index_cast %c3_i32 : i32 to index
    %62 = memref.load %arg0[%61] : memref<8xi32, #tpu.memory_space<smem>>
    %63 = arith.index_cast %62 : i32 to index
    %c0_25 = arith.constant 0 : index
    %64 = vector.load %arg5[%63, %c0_25] : memref<16x128xf32, #tpu.memory_space<vmem>>, vector<1x128xf32>
    %65 = arith.index_cast %c3_i32 : i32 to index
    %66 = memref.load %arg1[%65] : memref<8xi32, #tpu.memory_space<smem>>
    %67 = arith.index_cast %66 : i32 to index
    %c0_26 = arith.constant 0 : index
    %68 = vector.load %arg5[%67, %c0_26] : memref<16x128xf32, #tpu.memory_space<vmem>>, vector<1x128xf32>
    %69 = arith.mulf %64, %6 : vector<1x128xf32>
    %70 = arith.mulf %68, %7 : vector<1x128xf32>
    %71 = arith.addf %69, %70 : vector<1x128xf32>
    %72 = arith.addf %71, %8 : vector<1x128xf32>
    %cst_27 = arith.constant 0.000000e+00 : f32
    %73 = vector.broadcast %cst_27 : f32 to vector<1x128xf32>
    %74 = arith.maximumf %72, %73 : vector<1x128xf32>
    %c8_i32_28 = arith.constant 8 : i32
    %75 = arith.addi %c8_i32_28, %c3_i32 : i32
    %76 = arith.index_cast %75 : i32 to index
    %c0_29 = arith.constant 0 : index
    %77 = vector.load %arg5[%76, %c0_29] : memref<16x128xf32, #tpu.memory_space<vmem>>, vector<1x128xf32>
    tpu.vector_store %arg5[%76, %c0_29], %74 {strides = array<i32>} : memref<16x128xf32, #tpu.memory_space<vmem>>, vector<1x128xf32>,
    %c4_i32 = arith.constant 4 : i32
    %78 = arith.index_cast %c4_i32 : i32 to index
    %79 = memref.load %arg0[%78] : memref<8xi32, #tpu.memory_space<smem>>
    %80 = arith.index_cast %79 : i32 to index
    %c0_30 = arith.constant 0 : index
    %81 = vector.load %arg5[%80, %c0_30] : memref<16x128xf32, #tpu.memory_space<vmem>>, vector<1x128xf32>
    %82 = arith.index_cast %c4_i32 : i32 to index
    %83 = memref.load %arg1[%82] : memref<8xi32, #tpu.memory_space<smem>>
    %84 = arith.index_cast %83 : i32 to index
    %c0_31 = arith.constant 0 : index
    %85 = vector.load %arg5[%84, %c0_31] : memref<16x128xf32, #tpu.memory_space<vmem>>, vector<1x128xf32>
    %86 = arith.mulf %81, %6 : vector<1x128xf32>
    %87 = arith.mulf %85, %7 : vector<1x128xf32>
    %88 = arith.addf %86, %87 : vector<1x128xf32>
    %89 = arith.addf %88, %8 : vector<1x128xf32>
    %cst_32 = arith.constant 0.000000e+00 : f32
    %90 = vector.broadcast %cst_32 : f32 to vector<1x128xf32>
    %91 = arith.maximumf %89, %90 : vector<1x128xf32>
    %c8_i32_33 = arith.constant 8 : i32
    %92 = arith.addi %c8_i32_33, %c4_i32 : i32
    %93 = arith.index_cast %92 : i32 to index
    %c0_34 = arith.constant 0 : index
    %94 = vector.load %arg5[%93, %c0_34] : memref<16x128xf32, #tpu.memory_space<vmem>>, vector<1x128xf32>
    tpu.vector_store %arg5[%93, %c0_34], %91 {strides = array<i32>} : memref<16x128xf32, #tpu.memory_space<vmem>>, vector<1x128xf32>,
    %c5_i32 = arith.constant 5 : i32
    %95 = arith.index_cast %c5_i32 : i32 to index
    %96 = memref.load %arg0[%95] : memref<8xi32, #tpu.memory_space<smem>>
    %97 = arith.index_cast %96 : i32 to index
    %c0_35 = arith.constant 0 : index
    %98 = vector.load %arg5[%97, %c0_35] : memref<16x128xf32, #tpu.memory_space<vmem>>, vector<1x128xf32>
    %99 = arith.index_cast %c5_i32 : i32 to index
    %100 = memref.load %arg1[%99] : memref<8xi32, #tpu.memory_space<smem>>
    %101 = arith.index_cast %100 : i32 to index
    %c0_36 = arith.constant 0 : index
    %102 = vector.load %arg5[%101, %c0_36] : memref<16x128xf32, #tpu.memory_space<vmem>>, vector<1x128xf32>
    %103 = arith.mulf %98, %6 : vector<1x128xf32>
    %104 = arith.mulf %102, %7 : vector<1x128xf32>
    %105 = arith.addf %103, %104 : vector<1x128xf32>
    %106 = arith.addf %105, %8 : vector<1x128xf32>
    %cst_37 = arith.constant 0.000000e+00 : f32
    %107 = vector.broadcast %cst_37 : f32 to vector<1x128xf32>
    %108 = arith.maximumf %106, %107 : vector<1x128xf32>
    %c8_i32_38 = arith.constant 8 : i32
    %109 = arith.addi %c8_i32_38, %c5_i32 : i32
    %110 = arith.index_cast %109 : i32 to index
    %c0_39 = arith.constant 0 : index
    %111 = vector.load %arg5[%110, %c0_39] : memref<16x128xf32, #tpu.memory_space<vmem>>, vector<1x128xf32>
    tpu.vector_store %arg5[%110, %c0_39], %108 {strides = array<i32>} : memref<16x128xf32, #tpu.memory_space<vmem>>, vector<1x128xf32>,
    %c6_i32 = arith.constant 6 : i32
    %112 = arith.index_cast %c6_i32 : i32 to index
    %113 = memref.load %arg0[%112] : memref<8xi32, #tpu.memory_space<smem>>
    %114 = arith.index_cast %113 : i32 to index
    %c0_40 = arith.constant 0 : index
    %115 = vector.load %arg5[%114, %c0_40] : memref<16x128xf32, #tpu.memory_space<vmem>>, vector<1x128xf32>
    %116 = arith.index_cast %c6_i32 : i32 to index
    %117 = memref.load %arg1[%116] : memref<8xi32, #tpu.memory_space<smem>>
    %118 = arith.index_cast %117 : i32 to index
    %c0_41 = arith.constant 0 : index
    %119 = vector.load %arg5[%118, %c0_41] : memref<16x128xf32, #tpu.memory_space<vmem>>, vector<1x128xf32>
    %120 = arith.mulf %115, %6 : vector<1x128xf32>
    %121 = arith.mulf %119, %7 : vector<1x128xf32>
    %122 = arith.addf %120, %121 : vector<1x128xf32>
    %123 = arith.addf %122, %8 : vector<1x128xf32>
    %cst_42 = arith.constant 0.000000e+00 : f32
    %124 = vector.broadcast %cst_42 : f32 to vector<1x128xf32>
    %125 = arith.maximumf %123, %124 : vector<1x128xf32>
    %c8_i32_43 = arith.constant 8 : i32
    %126 = arith.addi %c8_i32_43, %c6_i32 : i32
    %127 = arith.index_cast %126 : i32 to index
    %c0_44 = arith.constant 0 : index
    %128 = vector.load %arg5[%127, %c0_44] : memref<16x128xf32, #tpu.memory_space<vmem>>, vector<1x128xf32>
    tpu.vector_store %arg5[%127, %c0_44], %125 {strides = array<i32>} : memref<16x128xf32, #tpu.memory_space<vmem>>, vector<1x128xf32>,
    %c7_i32 = arith.constant 7 : i32
    %129 = arith.index_cast %c7_i32 : i32 to index
    %130 = memref.load %arg0[%129] : memref<8xi32, #tpu.memory_space<smem>>
    %131 = arith.index_cast %130 : i32 to index
    %c0_45 = arith.constant 0 : index
    %132 = vector.load %arg5[%131, %c0_45] : memref<16x128xf32, #tpu.memory_space<vmem>>, vector<1x128xf32>
    %133 = arith.index_cast %c7_i32 : i32 to index
    %134 = memref.load %arg1[%133] : memref<8xi32, #tpu.memory_space<smem>>
    %135 = arith.index_cast %134 : i32 to index
    %c0_46 = arith.constant 0 : index
    %136 = vector.load %arg5[%135, %c0_46] : memref<16x128xf32, #tpu.memory_space<vmem>>, vector<1x128xf32>
    %137 = arith.mulf %132, %6 : vector<1x128xf32>
    %138 = arith.mulf %136, %7 : vector<1x128xf32>
    %139 = arith.addf %137, %138 : vector<1x128xf32>
    %140 = arith.addf %139, %8 : vector<1x128xf32>
    %cst_47 = arith.constant 0.000000e+00 : f32
    %141 = vector.broadcast %cst_47 : f32 to vector<1x128xf32>
    %142 = arith.maximumf %140, %141 : vector<1x128xf32>
    %c8_i32_48 = arith.constant 8 : i32
    %143 = arith.addi %c8_i32_48, %c7_i32 : i32
    %144 = arith.index_cast %143 : i32 to index
    %c0_49 = arith.constant 0 : index
    %145 = vector.load %arg5[%144, %c0_49] : memref<16x128xf32, #tpu.memory_space<vmem>>, vector<1x128xf32>
    tpu.vector_store %arg5[%144, %c0_49], %142 {strides = array<i32>} : memref<16x128xf32, #tpu.memory_space<vmem>>, vector<1x128xf32>,
    %c8_i32_50 = arith.constant 8 : i32
    %c7_51 = arith.constant 7 : index
    %146 = memref.load %arg0[%c7_51] : memref<8xi32, #tpu.memory_space<smem>>
    %147 = arith.index_cast %146 : i32 to index
    %c0_52 = arith.constant 0 : index
    %148 = vector.load %arg5[%147, %c0_52] : memref<16x128xf32, #tpu.memory_space<vmem>>, vector<1x128xf32>
    %c7_53 = arith.constant 7 : index
    %149 = memref.load %arg1[%c7_53] : memref<8xi32, #tpu.memory_space<smem>>
    %150 = arith.index_cast %149 : i32 to index
    %c0_54 = arith.constant 0 : index
    %151 = vector.load %arg5[%150, %c0_54] : memref<16x128xf32, #tpu.memory_space<vmem>>, vector<1x128xf32>
    %152 = arith.mulf %148, %2 : vector<1x128xf32>
    %153 = arith.mulf %151, %3 : vector<1x128xf32>
    %154 = arith.addf %152, %153 : vector<1x128xf32>
    %155 = arith.addf %154, %4 : vector<1x128xf32>
    %cst_55 = arith.constant 0.000000e+00 : f32
    %156 = vector.broadcast %cst_55 : f32 to vector<1x128xf32>
    %157 = arith.maximumf %155, %156 : vector<1x128xf32>
    %158 = arith.mulf %157, %5 : vector<1x128xf32>
    %cst_56 = arith.constant dense<0.000000e+00> : vector<1xf32>
    %159 = vector.multi_reduction <add>, %158, %cst_56 [1] : vector<1x128xf32> to vector<1xf32>
    %160 = vector.shape_cast %159 : vector<1xf32> to vector<1x1xf32>
    %161 = vector.broadcast %160 : vector<1x1xf32> to vector<1x128xf32>
    %162 = arith.addf %161, %9 : vector<1x128xf32>
    %c0_57 = arith.constant 0 : index
    %c0_58 = arith.constant 0 : index
    %163 = vector.load %arg4[%c0_57, %c0_58] : memref<1x128xf32, #tpu.memory_space<vmem>>, vector<1x128xf32>
    tpu.vector_store %arg4[%c0_57, %c0_58], %162 {strides = array<i32>} : memref<1x128xf32, #tpu.memory_space<vmem>>, vector<1x128xf32>,
    return
  }
}

</mosaic_0001>

<bundles_post_ra>
// kernel: _fused_predict.1
= control target key start
LH: loop header
LB: loop body
LE: loop exit
PB: predicated region body
PF: predicated region fallthrough
CT: control target
= control target key end

     0   :  { %9 = vsyncpa [#allocation5], 0  ;;  %s364_s0 = inlined_call_operand.vmem [shape: s32[8], index: 0, kind: input, shape index: {}]   ;;  %s365_s1 = inlined_call_operand.vmem [shape: s32[8], index: 1, kind: input, shape index: {}]   ;;  %s366_s2 = inlined_call_operand.vmem [shape: f32[8,128], index: 2, kind: input, shape index: {}]   ;;  %s367_s3 = inlined_call_operand.vmem [shape: f32[8,128], index: 3, kind: input, shape index: {}]   ;;  %s368_s4 = inlined_call_operand.hbm [shape: f32[1,128], index: 4, kind: output, shape index: {}]  }
   0x1   :  { %10 = vsyncpa [#allocation7], 0 }
   0x2   :  { %11 = vsyncpa [#allocation4], 0  ;;  %s18_s17 = sshll.u32 %s364_s0, 4  ;;  %s28_s20 = sshll.u32 %s365_s1, 4  ;;  %s19_s17 = int_to_ptr.vmem [resolvable:$true] %s18_s17  ;;  %s29_s20 = int_to_ptr.vmem [resolvable:$true] %s28_s20 }
   0x3   :  { %s220_s21 = scalar_lea.vmem %s19_s17, 16  ;;  %p225_p1 = scmp.lt.s32.totalorder %s19_s17, %s19_s17 }
   0x4   :  { %p221_p0 = scmp.ne.s32.totalorder %s19_s17, %s220_s21  ;;  %p226_p2 = scmp.lt.s32.totalorder %s220_s21, %s220_s21 }
   0x6   :  { %p227_p3 = por %p226_p2, %p225_p1 }
   0x8   :  { %p228_p4 = pnand %p227_p3, %p221_p0 }
   0xa   :  { %231 = shalt.err (!%p228_p4)
}
   0xb   :  { %s270_s22 = smov [#allocation3]   ;;  %s232_s23 = scalar_lea.vmem %s29_s20, 16 }
   0xc   :  { %21 = dma.vmem_to_smem %s19_s17, 16, %s270_s22, [#allocation5]  }
   0xd   :  { %p233_p5 = scmp.ne.s32.totalorder %s29_s20, %s232_s23  ;;  %p237_p6 = scmp.lt.s32.totalorder %s29_s20, %s29_s20 }
   0xe   :  { %p238_p7 = scmp.lt.s32.totalorder %s232_s23, %s232_s23 }
  0x10   :  { %p239_p8 = por %p238_p7, %p237_p6 }
  0x12   :  { %p240_p9 = pnand %p239_p8, %p233_p5 }
  0x14   :  { %243 = shalt.err (!%p240_p9)
}
  0x15   :  { %s271_s0 = smov [#allocation6]  }
  0x16   :  { %31 = dma.vmem_to_smem %s29_s20, 16, %s271_s0, [#allocation7]  }
  0x17   :  { %264 = dma.done.wait [#allocation5], 16  }
  0x18   :  { %265 = vsyncadd [#allocation5], 4294967280 }
  0x19   :  { %266 = dma.done.wait [#allocation7], 16  }
  0x1a   :  { %267 = vsyncadd [#allocation7], 4294967280 }
  0x1b   :  { %42 = sfence }
  0x1c   :  { %v43_v0 = vld [vmem:[%s366_s2] sm:$0xff]  ;;  %s53_s25 = sld [smem:[#allocation3]]  ;;  %vm161_vm0 = vcmask 1040384  }
  0x1d   :  { %44 = vst [vmem:[#allocation2] sm:$0xff] %v43_v0  ;;  %s56_s26 = sld [smem:[#allocation6]]  ;;  %v310_v1 = vld [vmem:[%s367_s3 + $0x4] sm:$0x1]  ;;  %v315_v2 = vld [vmem:[%s367_s3 + $0x5] sm:$0x1] }
  0x1e   :  { %v322_v7 = vld [vmem:[%s367_s3 + $0x6] sm:$0x1]  ;;  %s201_s8 = sld [smem:[#allocation3 + $0x1]]  ;;  %v45_v60 = vld [vmem:[%s367_s3] sm:$0x1] }
  0x1f   :  { %s202_s9 = sld [smem:[#allocation6 + $0x1]]  ;;  %v46_v61 = vld [vmem:[%s367_s3 + $0x1] sm:$0x1] }
  0x20   :  { %s203_s12 = sld [smem:[#allocation3 + $0x2]] }
  0x21   :  { %s204_s13 = sld [smem:[#allocation6 + $0x2]] }
  0x22   :  { %s54_s5 = scalar_lea.vmem [#allocation2], %s53_s25  ;;  %s205_s16 = sld [smem:[#allocation3 + $0x3]] }
  0x23   :  { %s57_s6 = scalar_lea.vmem [#allocation2], %s56_s26  ;;  %s206_s17 = sld [smem:[#allocation6 + $0x3]] }
  0x24   :  { %v55_v3 = vld [vmem:[%s54_s5] sm:$0x1]  ;;  %s66_s10 = scalar_lea.vmem [#allocation2], %s201_s8  ;;  %s207_s20 = sld [smem:[#allocation3 + $0x4]] }
  0x25   :  { %v58_v4 = vld [vmem:[%s57_s6] sm:$0x1]  ;;  %v59_v5 = vmul.f32 %v55_v3, %v310_v1  ;;  %s69_s11 = scalar_lea.vmem [#allocation2], %s202_s9  ;;  %s208_s21 = sld [smem:[#allocation6 + $0x4]] }
  0x26   :  { %v60_v6 = vmul.f32 %v58_v4, %v315_v2  ;;  %s78_s14 = scalar_lea.vmem [#allocation2], %s203_s12  ;;  %s209_s0 = sld [smem:[#allocation3 + $0x5]] }
  0x27   :  { %s81_s15 = scalar_lea.vmem [#allocation2], %s204_s13  ;;  %s210_s1 = sld [smem:[#allocation6 + $0x5]] }
  0x28   :  { %v61_v8 = vadd.f32 %v60_v6, %v59_v5  ;;  %s90_s18 = scalar_lea.vmem [#allocation2], %s205_s16  ;;  %s211_s26 = sld [smem:[#allocation3 + $0x6]]  ;;  %v48_v5 = vld [vmem:[%s367_s3 + $0x3] sm:$0x1] }
  0x29   :  { %s93_s19 = scalar_lea.vmem [#allocation2], %s206_s17  ;;  %s212_s27 = sld [smem:[#allocation6 + $0x6]] }
  0x2a   :  { %v62_v9 = vadd.f32 %v61_v8, %v322_v7  ;;  %s102_s22 = scalar_lea.vmem [#allocation2], %s207_s20  ;;  %s213_s30 = sld [smem:[#allocation3 + $0x7]] }
  0x2b   :  { %s105_s23 = scalar_lea.vmem [#allocation2], %s208_s21  ;;  %s214_s5 = sld [smem:[#allocation6 + $0x7]] }
  0x2c   :  { %v63_v10 = vmax.f32 %v62_v9, 0.0  ;;  %s114_s24 = scalar_lea.vmem [#allocation2], %s209_s0  ;;  %v52_v9 = vld [vmem:[%s367_s3 + $0x7] sm:$0x1]  ;;  %s272_s17 = smov [#allocation8]  }
  0x2d   :  { %s117_s25 = scalar_lea.vmem [#allocation2], %s210_s1 }
  0x2e   :  { %64 = vst [vmem:[#allocation2 + $0x8] sm:$0x1] %v63_v10  ;;  %s126_s28 = scalar_lea.vmem [#allocation2], %s211_s26 }
  0x2f   :  { %s129_s29 = scalar_lea.vmem [#allocation2], %s212_s27 }
  0x30   :  { %s138_s6 = scalar_lea.vmem [#allocation2], %s213_s30 }
  0x31   :  { %s141_s2 = scalar_lea.vmem [#allocation2], %s214_s5 }
  0x35   :  { %v67_v11 = vld [vmem:[%s66_s10] sm:$0x1] }
  0x36   :  { %v70_v12 = vld [vmem:[%s69_s11] sm:$0x1]  ;;  %v71_v13 = vmul.f32 %v67_v11, %v310_v1 }
  0x37   :  { %v72_v14 = vmul.f32 %v70_v12, %v315_v2 }
  0x39   :  { %v73_v15 = vadd.f32 %v72_v14, %v71_v13 }
  0x3b   :  { %v74_v16 = vadd.f32 %v73_v15, %v322_v7 }
  0x3d   :  { %v75_v17 = vmax.f32 %v74_v16, 0.0 }
  0x3f   :  { %76 = vst [vmem:[#allocation2 + $0x9] sm:$0x1] %v75_v17 }
  0x46   :  { %v79_v18 = vld [vmem:[%s78_s14] sm:$0x1] }
  0x47   :  { %v82_v19 = vld [vmem:[%s81_s15] sm:$0x1]  ;;  %v83_v20 = vmul.f32 %v79_v18, %v310_v1 }
  0x48   :  { %v84_v21 = vmul.f32 %v82_v19, %v315_v2 }
  0x4a   :  { %v85_v22 = vadd.f32 %v84_v21, %v83_v20 }
  0x4c   :  { %v86_v23 = vadd.f32 %v85_v22, %v322_v7 }
  0x4e   :  { %v87_v24 = vmax.f32 %v86_v23, 0.0 }
  0x50   :  { %88 = vst [vmem:[#allocation2 + $0xa] sm:$0x1] %v87_v24 }
  0x57   :  { %v91_v25 = vld [vmem:[%s90_s18] sm:$0x1]  ;;  %s173_s18 = sshll.u32 %s272_s17, 4  ;;  %s174_s18 = int_to_ptr.vmem [resolvable:$true] %s173_s18 }
  0x58   :  { %v94_v26 = vld [vmem:[%s93_s19] sm:$0x1]  ;;  %v95_v27 = vmul.f32 %v91_v25, %v310_v1  ;;  %s244_s19 = scalar_lea.vmem %s174_s18, 16  ;;  %s248_s20 = scalar_lea.vmem %s174_s18, 32 }
  0x59   :  { %v96_v28 = vmul.f32 %v94_v26, %v315_v2  ;;  %p245_p10 = scmp.ne.s32.totalorder %s174_s18, %s244_s19  ;;  %p249_p11 = scmp.lt.s32.totalorder %s174_s18, %s174_s18 }
  0x5a   :  { %p250_p12 = scmp.lt.s32.totalorder %s248_s20, %s244_s19 }
  0x5b   :  { %v97_v29 = vadd.f32 %v96_v28, %v95_v27 }
  0x5c   :  { %p251_p13 = por %p250_p12, %p249_p11 }
  0x5d   :  { %v98_v30 = vadd.f32 %v97_v29, %v322_v7 }
  0x5e   :  { %p252_p0 = pnand %p251_p13, %p245_p10 }
  0x5f   :  { %v99_v31 = vmax.f32 %v98_v30, 0.0 }
  0x61   :  { %100 = vst [vmem:[#allocation2 + $0xb] sm:$0x1] %v99_v31 }
  0x68   :  { %v103_v32 = vld [vmem:[%s102_s22] sm:$0x1] }
  0x69   :  { %v106_v33 = vld [vmem:[%s105_s23] sm:$0x1]  ;;  %v107_v34 = vmul.f32 %v103_v32, %v310_v1 }
  0x6a   :  { %v108_v35 = vmul.f32 %v106_v33, %v315_v2 }
  0x6c   :  { %v109_v36 = vadd.f32 %v108_v35, %v107_v34 }
  0x6e   :  { %v110_v37 = vadd.f32 %v109_v36, %v322_v7 }
  0x70   :  { %v111_v38 = vmax.f32 %v110_v37, 0.0 }
  0x72   :  { %112 = vst [vmem:[#allocation2 + $0xc] sm:$0x1] %v111_v38 }
  0x79   :  { %v115_v39 = vld [vmem:[%s114_s24] sm:$0x1] }
  0x7a   :  { %v118_v40 = vld [vmem:[%s117_s25] sm:$0x1]  ;;  %v119_v41 = vmul.f32 %v115_v39, %v310_v1 }
  0x7b   :  { %v120_v42 = vmul.f32 %v118_v40, %v315_v2 }
  0x7d   :  { %v121_v43 = vadd.f32 %v120_v42, %v119_v41 }
  0x7f   :  { %v122_v44 = vadd.f32 %v121_v43, %v322_v7 }
  0x81   :  { %v123_v45 = vmax.f32 %v122_v44, 0.0 }
  0x83   :  { %124 = vst [vmem:[#allocation2 + $0xd] sm:$0x1] %v123_v45 }
  0x8a   :  { %v127_v46 = vld [vmem:[%s126_s28] sm:$0x1] }
  0x8b   :  { %v130_v47 = vld [vmem:[%s129_s29] sm:$0x1]  ;;  %v131_v48 = vmul.f32 %v127_v46, %v310_v1 }
  0x8c   :  { %v132_v49 = vmul.f32 %v130_v47, %v315_v2 }
  0x8e   :  { %v133_v50 = vadd.f32 %v132_v49, %v131_v48 }
  0x90   :  { %v134_v51 = vadd.f32 %v133_v50, %v322_v7 }
  0x92   :  { %v135_v52 = vmax.f32 %v134_v51, 0.0 }
  0x94   :  { %136 = vst [vmem:[#allocation2 + $0xe] sm:$0x1] %v135_v52 }
  0x9b   :  { %v139_v53 = vld [vmem:[%s138_s6] sm:$0x1] }
  0x9c   :  { %v142_v54 = vld [vmem:[%s141_s2] sm:$0x1]  ;;  %v143_v55 = vmul.f32 %v139_v53, %v310_v1  ;;  %v47_v1 = vld [vmem:[%s367_s3 + $0x2] sm:$0x1] }
  0x9d   :  { %v144_v56 = vmul.f32 %v142_v54, %v315_v2 }
  0x9f   :  { %v145_v57 = vadd.f32 %v144_v56, %v143_v55 }
  0xa1   :  { %v146_v58 = vadd.f32 %v145_v57, %v322_v7 }
  0xa3   :  { %v147_v59 = vmax.f32 %v146_v58, 0.0 }
  0xa5   :  { %148 = vst [vmem:[#allocation2 + $0xf] sm:$0x1] %v147_v59 }
  0xac   :  { %v151_v62 = vld [vmem:[%s138_s6] sm:$0x1] }
  0xad   :  { %v154_v63 = vld [vmem:[%s141_s2] sm:$0x1]  ;;  %v155_v0 = vmul.f32 %v151_v62, %v45_v60 }
  0xae   :  { %v156_v3 = vmul.f32 %v154_v63, %v46_v61 }
  0xb0   :  { %v157_v2 = vadd.f32 %v156_v3, %v155_v0 }
  0xb2   :  { %v158_v4 = vadd.f32 %v157_v2, %v47_v1 }
  0xb4   :  { %v159_v6 = vmax.f32 %v158_v4, 0.0 }
  0xb6   :  { %v160_v7 = vmul.f32 %v159_v6, %v48_v5 }
  0xb8   :  { %v162_v8 = vsel %vm161_vm0, %v160_v7, 0.0 }
  0xb9   :  { %163 = vadd.xlane.f32.xlu0 %v162_v8 }
 0x142   :  { %v164_v10 = vpop.xlane.xlu0 %163 }
 0x143   :  { %v165_v11 = vadd.f32 %v164_v10, %v52_v9 }
 0x145   :  { %166 = vst [vmem:[#allocation8] sm:$0x1] %v165_v11 }
 0x146   :  { %255 = shalt.err (!%p252_p0)
}
 0x147   :  { %176 = dma.vmem_to_hbm [thread:$0]  %s174_s18, 16, %s368_s4, [#allocation4]  }
 0x148   :  { %268 = dma.done.wait [#allocation4], 16  }
 0x149   :  { %269 = vsyncadd [#allocation4], 4294967280 }
 0x14a   :  { %180 = vsyncpa [#allocation4], 1 }
 0x14b   :  { %181 = vsyncpa [#allocation5], 1 }
 0x14c   :  { %182 = vsyncpa [#allocation7], 1 }

</bundles_post_ra>
